<compile_context>
chip_gen: v7x
topology: tpu7x:2x2x1
jax: 0.10.0
libtpu: 0.0.40
codegen_flags: <defaults>
</compile_context>

<pallas_src>
import jax
import jax.numpy as jnp
from jax.experimental import pallas as pl
from jax.experimental.pallas import tpu as pltpu


def _repr_kernel(x_ref, v_ref,
                 w2t_ref, b2_ref, w1t_ref, b1_ref,
                 w3x_ref, w3v_ref, b3_ref,
                 w4t_ref, b4_ref,
                 out_ref):
    # linear2(x) / linear1(v) + ReLU (f32 accumulate, f32 epilogue).
    x_h = jnp.maximum(
        jnp.dot(x_ref[...], w2t_ref[...], preferred_element_type=jnp.float32)
        + b2_ref[...], 0.0)
    v_h = jnp.maximum(
        jnp.dot(v_ref[...], w1t_ref[...], preferred_element_type=jnp.float32)
        + b1_ref[...], 0.0)

    # linear3 on the implicit concat [x_h | v_h]: split-w3 instead of a VMEM
    # concatenate -> merge @ w3.T == x_h @ w3[:, :k].T + v_h @ w3[:, k:].T.
    r = (jnp.dot(x_h, w3x_ref[...], preferred_element_type=jnp.float32)
         + jnp.dot(v_h, w3v_ref[...], preferred_element_type=jnp.float32)
         + b3_ref[...])
    r = jnp.maximum(r, 0.0)

    # linear4 + ReLU.
    r = jnp.dot(r, w4t_ref[...], preferred_element_type=jnp.float32) + b4_ref[...]
    out_ref[...] = jnp.maximum(r, 0.0).astype(out_ref.dtype)


def pack_params(params):
    """Pre-pack PyTorch-layout (out, in) params once at load time."""
    w1, b1, w2, b2, w3, b3, w4, b4 = params
    k = w1.shape[0]
    f32 = jnp.float32
    return (
        w2.T.astype(f32), b2.reshape(1, k).astype(f32),        # linear2 (x path)
        w1.T.astype(f32), b1.reshape(1, k).astype(f32),        # linear1 (v path)
        w3[:, :k].T.astype(f32), w3[:, k:].T.astype(f32),      # linear3 split
        b3.reshape(1, k).astype(f32),
        w4.T.astype(f32), b4.reshape(1, k).astype(f32),        # linear4
    )


def _round_up(n, m):
    return ((n + m - 1) // m) * m


def representation_network(x, v, packed, *, block_b=8192):
    """x: [B, x_dim], v: [B, v_dim]. Returns r: [B, k] (matches PyTorch forward)."""
    (w2_t, b2, w1_t, b1, w3x_t, w3v_t, b3, w4_t, b4) = packed
    x_dim = w2_t.shape[0]
    v_dim = w1_t.shape[0]
    k = w2_t.shape[1]

    f32 = jnp.float32
    x = x.astype(f32)
    v = v.astype(f32)

    # --- Batch tiling --------------------------------------------------------
    B = x.shape[0]
    block_b = max(8, (block_b // 8) * 8)

    if B <= 16:
        # Tiny batch: one full-extent block (no (8,128) constraint, no padding).
        bb = B
        B_pad = B
    else:
        # Guarantee >= 2 grid steps (megacore on v7x), rows multiple of 8.
        bb = min(block_b, _round_up((B + 1) // 2, 8))
        # Re-balance the tile so the last block carries minimal padding.
        B_pad0 = _round_up(B, 8)
        num_blocks = pl.cdiv(B_pad0, bb)
        bb = _round_up(pl.cdiv(B_pad0, num_blocks), 8)
        B_pad = num_blocks * bb

    if B_pad != B:
        x = jnp.pad(x, ((0, B_pad - B), (0, 0)))
        v = jnp.pad(v, ((0, B_pad - B), (0, 0)))
    grid = (B_pad // bb,)

    # Weights/biases: constant block index -> stay resident in VMEM across steps.
    def _resident(shape):
        return pl.BlockSpec(shape, lambda i: (0, 0))

    in_specs = [
        pl.BlockSpec((bb, x_dim), lambda i: (i, 0)),   # x: tiled over batch
        pl.BlockSpec((bb, v_dim), lambda i: (i, 0)),   # v: tiled over batch
        _resident((x_dim, k)),                         # w2.T
        _resident((1, k)),                             # b2
        _resident((v_dim, k)),                         # w1.T
        _resident((1, k)),                             # b1
        _resident((k, k)),                             # w3 x-half (transposed)
        _resident((k, k)),                             # w3 v-half (transposed)
        _resident((1, k)),                             # b3
        _resident((k, k)),                             # w4.T
        _resident((1, k)),                             # b4
    ]
    out_spec = pl.BlockSpec((bb, k), lambda i: (i, 0))  # unpadded lanes (= full k)

    # Advisory cost estimate (no padded-MAC over-reporting now).
    flops = 2 * B_pad * (x_dim * k + v_dim * k + 2 * k * k + k * k)
    bytes_accessed = 4 * (B_pad * (x_dim + v_dim + k)
                          + (x_dim + v_dim + 3 * k) * k + 4 * k)
    cost = pl.CostEstimate(flops=flops, transcendentals=0,
                           bytes_accessed=bytes_accessed)

    out = pl.pallas_call(
        _repr_kernel,
        out_shape=jax.ShapeDtypeStruct((B_pad, k), jnp.float32),
        grid=grid,
        in_specs=in_specs,
        out_specs=out_spec,
        compiler_params=pltpu.CompilerParams(
            dimension_semantics=("parallel",),      # splits batch across TCs on v7x
            vmem_limit_bytes=32 * 1024 * 1024,      # fits v5e/v6e/v7x comfortably
        ),
        cost_estimate=cost,
    )(x, v, w2_t, b2, w1_t, b1, w3x_t, w3v_t, b3, w4_t, b4)

    return out[:B] if B_pad != B else out


def _init_linear(key, out_dim, in_dim):
    """Deterministic PyTorch-style init: U(-1/sqrt(in), 1/sqrt(in))."""
    kw, kb = jax.random.split(key)
    bound = 1.0 / jnp.sqrt(jnp.float32(in_dim))
    w = jax.random.uniform(kw, (out_dim, in_dim), jnp.float32, -bound, bound)
    b = jax.random.uniform(kb, (out_dim,), jnp.float32, -bound, bound)
    return w, b


def _reference(x, v, params):
    """Pure-JAX reference matching the PyTorch forward exactly."""
    w1, b1, w2, b2, w3, b3, w4, b4 = params
    v_h = jax.nn.relu(v @ w1.T + b1)
    x_h = jax.nn.relu(x @ w2.T + b2)
    merge = jnp.concatenate([x_h, v_h], axis=1)
    r = jax.nn.relu(merge @ w3.T + b3)
    r = jax.nn.relu(r @ w4.T + b4)
    return r


if __name__ == "__main__":
    # Small shapes consistent with the module signature.
    B, x_dim, v_dim, r_dim = 8, 32, 16, 32
    k = r_dim

    root = jax.random.PRNGKey(0)
    kx, kv, k1, k2, k3, k4, kx2, kv2 = jax.random.split(root, 8)

    x = jax.random.normal(kx, (B, x_dim), jnp.float32)
    v = jax.random.normal(kv, (B, v_dim), jnp.float32)

    w1, b1 = _init_linear(k1, k, v_dim)       # linear1: v_dim -> k
    w2, b2 = _init_linear(k2, k, x_dim)       # linear2: x_dim -> k
    w3, b3 = _init_linear(k3, k, 2 * k)       # linear3: 2k -> k
    w4, b4 = _init_linear(k4, k, k)           # linear4: k -> k
    params = (w1, b1, w2, b2, w3, b3, w4, b4)

    # Pack (transpose / split / reshape) the weights ONCE at load time.
    packed = jax.tree.map(jnp.asarray, pack_params(params))

    fn = jax.jit(lambda x, v, p: representation_network(x, v, p))
    out = jax.block_until_ready(fn(x, v, packed))
    ref = _reference(x, v, params)
    assert out.shape == (B, k)
    assert out.dtype == jnp.float32
    assert jnp.allclose(out, ref, atol=1e-5, rtol=1e-5), "mismatch vs reference"

    # Exercise the gridded path (>= 2 grid steps, non-divisible batch).
    B2 = 600
    x2 = jax.random.normal(kx2, (B2, x_dim), jnp.float32)
    v2 = jax.random.normal(kv2, (B2, v_dim), jnp.float32)
    fn2 = jax.jit(lambda x, v, p: representation_network(x, v, p, block_b=256))
    out2 = jax.block_until_ready(fn2(x2, v2, packed))
    ref2 = _reference(x2, v2, params)
    assert out2.shape == (B2, k)
    assert jnp.allclose(out2, ref2, atol=1e-5, rtol=1e-5), "mismatch vs reference (grid)"

    print("KERNEL_OK")
</pallas_src>

<mosaic_0001>
module attributes {stable_mosaic.version = 11 : i64} {
  func.func @_repr_kernel(%arg0: i32, %arg1: memref<8x32xf32, #tpu.memory_space<vmem>>, %arg2: memref<8x16xf32, #tpu.memory_space<vmem>>, %arg3: memref<32x32xf32, #tpu.memory_space<vmem>>, %arg4: memref<1x32xf32, #tpu.memory_space<vmem>>, %arg5: memref<16x32xf32, #tpu.memory_space<vmem>>, %arg6: memref<1x32xf32, #tpu.memory_space<vmem>>, %arg7: memref<32x32xf32, #tpu.memory_space<vmem>>, %arg8: memref<32x32xf32, #tpu.memory_space<vmem>>, %arg9: memref<1x32xf32, #tpu.memory_space<vmem>>, %arg10: memref<32x32xf32, #tpu.memory_space<vmem>>, %arg11: memref<1x32xf32, #tpu.memory_space<vmem>>, %arg12: memref<8x32xf32, #tpu.memory_space<vmem>>) attributes {dimension_semantics = [#tpu.dimension_semantics<parallel>], iteration_bounds = array<i64: 1>, scalar_prefetch = 0 : i64, scratch_operands = 0 : i64, tpu.core_type = #tpu.core_type<tc>, window_params = [{transform_indices = @transform_0, window_bounds = array<i64: 8, 32>}, {transform_indices = @transform_1, window_bounds = array<i64: 8, 16>}, {pipeline_mode = #tpu.pipeline_mode<synchronous>, transform_indices = @transform_2, window_bounds = array<i64: 32, 32>}, {pipeline_mode = #tpu.pipeline_mode<synchronous>, transform_indices = @transform_3, window_bounds = array<i64: 1, 32>}, {pipeline_mode = #tpu.pipeline_mode<synchronous>, transform_indices = @transform_4, window_bounds = array<i64: 16, 32>}, {pipeline_mode = #tpu.pipeline_mode<synchronous>, transform_indices = @transform_5, window_bounds = array<i64: 1, 32>}, {pipeline_mode = #tpu.pipeline_mode<synchronous>, transform_indices = @transform_6, window_bounds = array<i64: 32, 32>}, {pipeline_mode = #tpu.pipeline_mode<synchronous>, transform_indices = @transform_7, window_bounds = array<i64: 32, 32>}, {pipeline_mode = #tpu.pipeline_mode<synchronous>, transform_indices = @transform_8, window_bounds = array<i64: 1, 32>}, {pipeline_mode = #tpu.pipeline_mode<synchronous>, transform_indices = @transform_9, window_bounds = array<i64: 32, 32>}, {pipeline_mode = #tpu.pipeline_mode<synchronous>, transform_indices = @transform_10, window_bounds = array<i64: 1, 32>}, {transform_indices = @transform_11, window_bounds = array<i64: 8, 32>}]} {
    %c0 = arith.constant 0 : index
    %c0_0 = arith.constant 0 : index
    %0 = vector.load %arg1[%c0, %c0_0] : memref<8x32xf32, #tpu.memory_space<vmem>>, vector<8x32xf32>
    %c0_1 = arith.constant 0 : index
    %c0_2 = arith.constant 0 : index
    %1 = vector.load %arg3[%c0_1, %c0_2] : memref<32x32xf32, #tpu.memory_space<vmem>>, vector<32x32xf32>
    %cst = arith.constant dense<0.000000e+00> : vector<8x32xf32>
    %2 = tpu.matmul %0, %1, %cst {dimension_numbers = #tpu.dot_dimension_numbers<[1], [0], [0], [1], [0, 0, 1, 1], [], []>} : vector<8x32xf32>, vector<32x32xf32>, vector<8x32xf32> -> vector<8x32xf32>
    %c0_3 = arith.constant 0 : index
    %c0_4 = arith.constant 0 : index
    %3 = vector.load %arg4[%c0_3, %c0_4] : memref<1x32xf32, #tpu.memory_space<vmem>>, vector<1x32xf32>
    %4 = vector.broadcast %3 : vector<1x32xf32> to vector<8x32xf32>
    %5 = arith.addf %2, %4 : vector<8x32xf32>
    %cst_5 = arith.constant 0.000000e+00 : f32
    %6 = vector.broadcast %cst_5 : f32 to vector<8x32xf32>
    %7 = arith.maximumf %5, %6 : vector<8x32xf32>
    %c0_6 = arith.constant 0 : index
    %c0_7 = arith.constant 0 : index
    %8 = vector.load %arg2[%c0_6, %c0_7] : memref<8x16xf32, #tpu.memory_space<vmem>>, vector<8x16xf32>
    %c0_8 = arith.constant 0 : index
    %c0_9 = arith.constant 0 : index
    %9 = vector.load %arg5[%c0_8, %c0_9] : memref<16x32xf32, #tpu.memory_space<vmem>>, vector<16x32xf32>
    %cst_10 = arith.constant dense<0.000000e+00> : vector<8x32xf32>
    %10 = tpu.matmul %8, %9, %cst_10 {dimension_numbers = #tpu.dot_dimension_numbers<[1], [0], [0], [1], [0, 0, 1, 1], [], []>} : vector<8x16xf32>, vector<16x32xf32>, vector<8x32xf32> -> vector<8x32xf32>
    %c0_11 = arith.constant 0 : index
    %c0_12 = arith.constant 0 : index
    %11 = vector.load %arg6[%c0_11, %c0_12] : memref<1x32xf32, #tpu.memory_space<vmem>>, vector<1x32xf32>
    %12 = vector.broadcast %11 : vector<1x32xf32> to vector<8x32xf32>
    %13 = arith.addf %10, %12 : vector<8x32xf32>
    %cst_13 = arith.constant 0.000000e+00 : f32
    %14 = vector.broadcast %cst_13 : f32 to vector<8x32xf32>
    %15 = arith.maximumf %13, %14 : vector<8x32xf32>
    %c0_14 = arith.constant 0 : index
    %c0_15 = arith.constant 0 : index
    %16 = vector.load %arg7[%c0_14, %c0_15] : memref<32x32xf32, #tpu.memory_space<vmem>>, vector<32x32xf32>
    %cst_16 = arith.constant dense<0.000000e+00> : vector<8x32xf32>
    %17 = tpu.matmul %7, %16, %cst_16 {dimension_numbers = #tpu.dot_dimension_numbers<[1], [0], [0], [1], [0, 0, 1, 1], [], []>} : vector<8x32xf32>, vector<32x32xf32>, vector<8x32xf32> -> vector<8x32xf32>
    %c0_17 = arith.constant 0 : index
    %c0_18 = arith.constant 0 : index
    %18 = vector.load %arg8[%c0_17, %c0_18] : memref<32x32xf32, #tpu.memory_space<vmem>>, vector<32x32xf32>
    %cst_19 = arith.constant dense<0.000000e+00> : vector<8x32xf32>
    %19 = tpu.matmul %15, %18, %cst_19 {dimension_numbers = #tpu.dot_dimension_numbers<[1], [0], [0], [1], [0, 0, 1, 1], [], []>} : vector<8x32xf32>, vector<32x32xf32>, vector<8x32xf32> -> vector<8x32xf32>
    %20 = arith.addf %17, %19 : vector<8x32xf32>
    %c0_20 = arith.constant 0 : index
    %c0_21 = arith.constant 0 : index
    %21 = vector.load %arg9[%c0_20, %c0_21] : memref<1x32xf32, #tpu.memory_space<vmem>>, vector<1x32xf32>
    %22 = vector.broadcast %21 : vector<1x32xf32> to vector<8x32xf32>
    %23 = arith.addf %20, %22 : vector<8x32xf32>
    %cst_22 = arith.constant 0.000000e+00 : f32
    %24 = vector.broadcast %cst_22 : f32 to vector<8x32xf32>
    %25 = arith.maximumf %23, %24 : vector<8x32xf32>
    %c0_23 = arith.constant 0 : index
    %c0_24 = arith.constant 0 : index
    %26 = vector.load %arg10[%c0_23, %c0_24] : memref<32x32xf32, #tpu.memory_space<vmem>>, vector<32x32xf32>
    %cst_25 = arith.constant dense<0.000000e+00> : vector<8x32xf32>
    %27 = tpu.matmul %25, %26, %cst_25 {dimension_numbers = #tpu.dot_dimension_numbers<[1], [0], [0], [1], [0, 0, 1, 1], [], []>} : vector<8x32xf32>, vector<32x32xf32>, vector<8x32xf32> -> vector<8x32xf32>
    %c0_26 = arith.constant 0 : index
    %c0_27 = arith.constant 0 : index
    %28 = vector.load %arg11[%c0_26, %c0_27] : memref<1x32xf32, #tpu.memory_space<vmem>>, vector<1x32xf32>
    %29 = vector.broadcast %28 : vector<1x32xf32> to vector<8x32xf32>
    %30 = arith.addf %27, %29 : vector<8x32xf32>
    %cst_28 = arith.constant 0.000000e+00 : f32
    %31 = vector.broadcast %cst_28 : f32 to vector<8x32xf32>
    %32 = arith.maximumf %30, %31 : vector<8x32xf32>
    %c0_29 = arith.constant 0 : index
    %c0_30 = arith.constant 0 : index
    %33 = vector.load %arg12[%c0_29, %c0_30] : memref<8x32xf32, #tpu.memory_space<vmem>>, vector<8x32xf32>
    tpu.vector_store %arg12[%c0_29, %c0_30], %32 {strides = array<i32>} : memref<8x32xf32, #tpu.memory_space<vmem>>, vector<8x32xf32>,
    return
  }
  func.func @transform_0(%arg0: i32) -> (i32, i32) {
    %c0_i32 = arith.constant 0 : i32
    %c0_i32_0 = arith.constant 0 : i32
    return %arg0, %c0_i32 : i32, i32
  }
  func.func @transform_1(%arg0: i32) -> (i32, i32) {
    %c0_i32 = arith.constant 0 : i32
    %c0_i32_0 = arith.constant 0 : i32
    return %arg0, %c0_i32 : i32, i32
  }
  func.func @transform_2(%arg0: i32) -> (i32, i32) {
    %c0_i32 = arith.constant 0 : i32
    %c0_i32_0 = arith.constant 0 : i32
    %c0_i32_1 = arith.constant 0 : i32
    return %c0_i32, %c0_i32_0 : i32, i32
  }
  func.func @transform_3(%arg0: i32) -> (i32, i32) {
    %c0_i32 = arith.constant 0 : i32
    %c0_i32_0 = arith.constant 0 : i32
    %c0_i32_1 = arith.constant 0 : i32
    return %c0_i32, %c0_i32_0 : i32, i32
  }
  func.func @transform_4(%arg0: i32) -> (i32, i32) {
    %c0_i32 = arith.constant 0 : i32
    %c0_i32_0 = arith.constant 0 : i32
    %c0_i32_1 = arith.constant 0 : i32
    return %c0_i32, %c0_i32_0 : i32, i32
  }
  func.func @transform_5(%arg0: i32) -> (i32, i32) {
    %c0_i32 = arith.constant 0 : i32
    %c0_i32_0 = arith.constant 0 : i32
    %c0_i32_1 = arith.constant 0 : i32
    return %c0_i32, %c0_i32_0 : i32, i32
  }
  func.func @transform_6(%arg0: i32) -> (i32, i32) {
    %c0_i32 = arith.constant 0 : i32
    %c0_i32_0 = arith.constant 0 : i32
    %c0_i32_1 = arith.constant 0 : i32
    return %c0_i32, %c0_i32_0 : i32, i32
  }
  func.func @transform_7(%arg0: i32) -> (i32, i32) {
    %c0_i32 = arith.constant 0 : i32
    %c0_i32_0 = arith.constant 0 : i32
    %c0_i32_1 = arith.constant 0 : i32
    return %c0_i32, %c0_i32_0 : i32, i32
  }
  func.func @transform_8(%arg0: i32) -> (i32, i32) {
    %c0_i32 = arith.constant 0 : i32
    %c0_i32_0 = arith.constant 0 : i32
    %c0_i32_1 = arith.constant 0 : i32
    return %c0_i32, %c0_i32_0 : i32, i32
  }
  func.func @transform_9(%arg0: i32) -> (i32, i32) {
    %c0_i32 = arith.constant 0 : i32
    %c0_i32_0 = arith.constant 0 : i32
    %c0_i32_1 = arith.constant 0 : i32
    return %c0_i32, %c0_i32_0 : i32, i32
  }
  func.func @transform_10(%arg0: i32) -> (i32, i32) {
    %c0_i32 = arith.constant 0 : i32
    %c0_i32_0 = arith.constant 0 : i32
    %c0_i32_1 = arith.constant 0 : i32
    return %c0_i32, %c0_i32_0 : i32, i32
  }
  func.func @transform_11(%arg0: i32) -> (i32, i32) {
    %c0_i32 = arith.constant 0 : i32
    %c0_i32_0 = arith.constant 0 : i32
    return %arg0, %c0_i32 : i32, i32
  }
}

</mosaic_0001>

<bundles_post_ra>
// kernel: _lambda_.1
= control target key start
LH: loop header
LB: loop body
LE: loop exit
PB: predicated region body
PF: predicated region fallthrough
CT: control target
= control target key end

     0   :  { %16 = vsyncpa [#allocation3], 0  ;;  %s1097_s0 = inlined_call_operand.hbm [shape: f32[8,32], index: 0, kind: input, shape index: {}]   ;;  %s1098_s1 = inlined_call_operand.hbm [shape: f32[8,16], index: 1, kind: input, shape index: {}]   ;;  %s1099_s2 = inlined_call_operand.hbm [shape: f32[32,32], index: 2, kind: input, shape index: {}]   ;;  %s1100_s3 = inlined_call_operand.vmem [shape: f32[1,32], index: 3, kind: input, shape index: {}]   ;;  %s1101_s4 = inlined_call_operand.hbm [shape: f32[16,32], index: 4, kind: input, shape index: {}]   ;;  %s1102_s5 = inlined_call_operand.vmem [shape: f32[1,32], index: 5, kind: input, shape index: {}]   ;;  %s1103_s6 = inlined_call_operand.hbm [shape: f32[32,32], index: 6, kind: input, shape index: {}]   ;;  %s1104_s7 = inlined_call_operand.hbm [shape: f32[32,32], index: 7, kind: input, shape index: {}]   ;;  %s1105_s8 = inlined_call_operand.hbm [shape: f32[1,32], index: 8, kind: input, shape index: {}]   ;;  %s1106_s9 = inlined_call_operand.vmem [shape: f32[32,32], index: 9, kind: input, shape index: {}]   ;;  %s1107_s10 = inlined_call_operand.vmem [shape: f32[1,32], index: 10, kind: input, shape index: {}]   ;;  %s1108_s11 = inlined_call_operand.hbm [shape: f32[8,32], index: 11, kind: output, shape index: {}]  }
   0x1   :  { %17 = vsyncpa [#allocation6], 0 }
   0x2   :  { %18 = vsyncpa [#allocation9], 0 }
   0x3   :  { %19 = vsyncpa [#allocation12], 0 }
   0x4   :  { %20 = vsyncpa [#allocation4], 0  ;;  %s876_s17 = smov [#allocation5]   ;;  %s690_s21 = scalar_lea.hbm %s1098_s1, 128 }
   0x5   :  { %s37_s18 = sshll.u32 %s876_s17, 4  ;;  %p691_p0 = scmp.ne.s32.totalorder %s1098_s1, %s690_s21  ;;  %s38_s18 = int_to_ptr.vmem [resolvable:$true] %s37_s18 }
   0x6   :  { %p694_p1 = scmp.lt.u32.totalorder %s690_s21, %s1098_s1 }
   0x8   :  { %p696_p2 = pnand %p694_p1, %p691_p0 }
   0xa   :  { %699 = shalt.err (!%p696_p2)
}
   0xb   :  { %s700_s26 = scalar_lea.vmem %s38_s18, 128  ;;  %p705_p4 = scmp.lt.s32.totalorder %s38_s18, %s38_s18 }
   0xc   :  { %p701_p3 = scmp.ne.s32.totalorder %s38_s18, %s700_s26  ;;  %p706_p5 = scmp.lt.s32.totalorder %s700_s26, %s700_s26 }
   0xe   :  { %p707_p6 = por %p706_p5, %p705_p4 }
  0x10   :  { %p708_p7 = pnand %p707_p6, %p701_p3 }
  0x12   :  { %711 = shalt.err (!%p708_p7)
}
  0x13   :  { %40 = dma.hbm_to_vmem [thread:$0]  %s1098_s1, 128, %s38_s18, [#allocation6]  }
  0x14   :  { %s877_s29 = smov [#allocation8]   ;;  %s878_s12 = smov [#allocation11]  }
  0x15   :  { %s60_s30 = sshll.u32 %s877_s29, 4  ;;  %s86_s13 = sshll.u32 %s878_s12, 4  ;;  %s61_s30 = int_to_ptr.vmem [resolvable:$true] %s60_s30  ;;  %s87_s13 = int_to_ptr.vmem [resolvable:$true] %s86_s13 }
  0x16   :  { %s712_s16 = scalar_lea.hbm %s1101_s4, 256 }
  0x17   :  { %p713_p8 = scmp.ne.s32.totalorder %s1101_s4, %s712_s16  ;;  %p716_p9 = scmp.lt.u32.totalorder %s712_s16, %s1101_s4 }
  0x19   :  { %p718_p10 = pnand %p716_p9, %p713_p8 }
  0x1b   :  { %721 = shalt.err (!%p718_p10)
}
  0x1c   :  { %s722_s1 = scalar_lea.vmem %s61_s30, 256  ;;  %p727_p12 = scmp.lt.s32.totalorder %s61_s30, %s61_s30 }
  0x1d   :  { %p723_p11 = scmp.ne.s32.totalorder %s61_s30, %s722_s1  ;;  %p728_p13 = scmp.lt.s32.totalorder %s722_s1, %s722_s1 }
  0x1f   :  { %p729_p0 = por %p728_p13, %p727_p12 }
  0x21   :  { %p730_p1 = pnand %p729_p0, %p723_p11 }
  0x23   :  { %733 = shalt.err (!%p730_p1)
}
  0x24   :  { %s879_s18 = smov 128   ;;  %s880_s22 = smov 8  }
  0x25   :  { %66 = dma.hbm_to_vmem [thread:$0]  %s1101_s4, 256, %s61_s30, [#allocation9], %s879_s18, %s879_s18, %s880_s22  }
  0x26   :  { %s734_s27 = scalar_lea.hbm %s1104_s7, 512 }
  0x27   :  { %p735_p2 = scmp.ne.s32.totalorder %s1104_s7, %s734_s27  ;;  %p738_p3 = scmp.lt.u32.totalorder %s734_s27, %s1104_s7 }
  0x29   :  { %p740_p4 = pnand %p738_p3, %p735_p2 }
  0x2b   :  { %743 = shalt.err (!%p740_p4)
}
  0x2c   :  { %s744_s15 = scalar_lea.vmem %s87_s13, 512  ;;  %p749_p6 = scmp.lt.s32.totalorder %s87_s13, %s87_s13 }
  0x2d   :  { %p745_p5 = scmp.ne.s32.totalorder %s87_s13, %s744_s15  ;;  %p750_p7 = scmp.lt.s32.totalorder %s744_s15, %s744_s15 }
  0x2f   :  { %p751_p8 = por %p750_p7, %p749_p6 }
  0x31   :  { %p752_p9 = pnand %p751_p8, %p745_p5 }
  0x33   :  { %755 = shalt.err (!%p752_p9)
}
  0x34   :  { %92 = dma.hbm_to_vmem [thread:$0]  %s1104_s7, 512, %s87_s13, [#allocation12], %s879_s18, %s879_s18, %s880_s22  }
  0x35   :  { %s881_s16 = smov [#allocation2]   ;;  %s882_s19 = smov [#allocation7]  }
  0x36   :  { %s27_s17 = sshll.u32 %s881_s16, 4  ;;  %s46_s20 = sshll.u32 %s882_s19, 4  ;;  %s28_s17 = int_to_ptr.vmem [resolvable:$true] %s27_s17  ;;  %s47_s20 = int_to_ptr.vmem [resolvable:$true] %s46_s20 }
  0x37   :  { %s756_s23 = scalar_lea.hbm %s1097_s0, 128 }
  0x38   :  { %p757_p10 = scmp.ne.s32.totalorder %s1097_s0, %s756_s23  ;;  %p760_p11 = scmp.lt.u32.totalorder %s756_s23, %s1097_s0 }
  0x3a   :  { %p762_p12 = pnand %p760_p11, %p757_p10 }
  0x3c   :  { %765 = shalt.err (!%p762_p12)
}
  0x3d   :  { %s766_s7 = scalar_lea.vmem %s28_s17, 128  ;;  %p771_p0 = scmp.lt.s32.totalorder %s28_s17, %s28_s17 }
  0x3e   :  { %p767_p13 = scmp.ne.s32.totalorder %s28_s17, %s766_s7  ;;  %p772_p1 = scmp.lt.s32.totalorder %s766_s7, %s766_s7 }
  0x40   :  { %p773_p2 = por %p772_p1, %p771_p0 }
  0x42   :  { %p774_p3 = pnand %p773_p2, %p767_p13 }
  0x44   :  { %777 = shalt.err (!%p774_p3)
}
  0x45   :  { %30 = dma.hbm_to_vmem [thread:$0]  %s1097_s0, 128, %s28_s17, [#allocation3]  }
  0x46   :  { %s778_s14 = scalar_lea.hbm %s1099_s2, 512 }
  0x47   :  { %p779_p4 = scmp.ne.s32.totalorder %s1099_s2, %s778_s14  ;;  %p782_p5 = scmp.lt.u32.totalorder %s778_s14, %s1099_s2 }
  0x49   :  { %p784_p6 = pnand %p782_p5, %p779_p4 }
  0x4b   :  { %787 = shalt.err (!%p784_p6)
}
  0x4c   :  { %s788_s19 = scalar_lea.vmem %s47_s20, 512  ;;  %p793_p8 = scmp.lt.s32.totalorder %s47_s20, %s47_s20 }
  0x4d   :  { %p789_p7 = scmp.ne.s32.totalorder %s47_s20, %s788_s19  ;;  %p794_p9 = scmp.lt.s32.totalorder %s788_s19, %s788_s19 }
  0x4f   :  { %p795_p10 = por %p794_p9, %p793_p8 }
  0x51   :  { %p796_p11 = pnand %p795_p10, %p789_p7 }
  0x53   :  { %799 = shalt.err (!%p796_p11)
}
  0x54   :  { %52 = dma.hbm_to_vmem [thread:$0]  %s1099_s2, 512, %s47_s20, [#allocation6], %s879_s18, %s879_s18, %s880_s22  }
  0x55   :  { %s883_s21 = smov [#allocation10]   ;;  %s884_s23 = smov [#allocation13]  }
  0x56   :  { %s74_s1 = sshll.u32 %s883_s21, 4  ;;  %s99_s24 = sshll.u32 %s884_s23, 4  ;;  %s75_s1 = int_to_ptr.vmem [resolvable:$true] %s74_s1  ;;  %s100_s24 = int_to_ptr.vmem [resolvable:$true] %s99_s24 }
  0x57   :  { %s800_s27 = scalar_lea.hbm %s1103_s6, 512 }
  0x58   :  { %p801_p12 = scmp.ne.s32.totalorder %s1103_s6, %s800_s27  ;;  %p804_p13 = scmp.lt.u32.totalorder %s800_s27, %s1103_s6 }
  0x5a   :  { %p806_p0 = pnand %p804_p13, %p801_p12 }
  0x5c   :  { %809 = shalt.err (!%p806_p0)
}
  0x5d   :  { %s810_s2 = scalar_lea.vmem %s75_s1, 512  ;;  %p815_p2 = scmp.lt.s32.totalorder %s75_s1, %s75_s1 }
  0x5e   :  { %p811_p1 = scmp.ne.s32.totalorder %s75_s1, %s810_s2  ;;  %p816_p3 = scmp.lt.s32.totalorder %s810_s2, %s810_s2 }
  0x60   :  { %p817_p4 = por %p816_p3, %p815_p2 }
  0x62   :  { %p818_p5 = pnand %p817_p4, %p811_p1 }
  0x64   :  { %821 = shalt.err (!%p818_p5)
}
  0x65   :  { %80 = dma.hbm_to_vmem [thread:$0]  %s1103_s6, 512, %s75_s1, [#allocation9], %s879_s18, %s879_s18, %s880_s22  }
  0x66   :  { %s822_s4 = scalar_lea.hbm %s1105_s8, 16 }
  0x67   :  { %p823_p6 = scmp.ne.s32.totalorder %s1105_s8, %s822_s4  ;;  %p826_p7 = scmp.lt.u32.totalorder %s822_s4, %s1105_s8 }
  0x69   :  { %p828_p8 = pnand %p826_p7, %p823_p6 }
  0x6b   :  { %831 = shalt.err (!%p828_p8)
}
  0x6c   :  { %s832_s17 = scalar_lea.vmem %s100_s24, 16  ;;  %s836_s21 = scalar_lea.vmem %s100_s24, 32 }
  0x6d   :  { %p833_p9 = scmp.ne.s32.totalorder %s100_s24, %s832_s17  ;;  %p837_p10 = scmp.lt.s32.totalorder %s100_s24, %s100_s24 }
  0x6e   :  { %p838_p11 = scmp.lt.s32.totalorder %s836_s21, %s832_s17 }
  0x70   :  { %p839_p12 = por %p838_p11, %p837_p10 }
  0x72   :  { %p840_p13 = pnand %p839_p12, %p833_p9 }
  0x74   :  { %843 = shalt.err (!%p840_p13)
}
  0x75   :  { %102 = dma.hbm_to_vmem [thread:$0]  %s1105_s8, 16, %s100_s24, [#allocation12]  }
  0x76   :  { %866 = dma.done.wait [#allocation3], 128  }
  0x77   :  { %867 = vsyncadd [#allocation3], 4294967168 }
  0x78   :  { %868 = dma.done.wait [#allocation6], 640  }
  0x79   :  { %869 = vsyncadd [#allocation6], 4294966656 }
  0x7a   :  { %870 = dma.done.wait [#allocation9], 768  }
  0x7b   :  { %871 = vsyncadd [#allocation9], 4294966528 }
  0x7c   :  { %872 = dma.done.wait [#allocation12], 528  }
  0x7d   :  { %873 = vsyncadd [#allocation12], 4294966768  ;;  %v885_v0 = vmov 0.0|0.0   ;;  %vm886_vm0 = vmmov 0   ;;  %v887_v1 = vmov 0.0   ;;  %v129_v2 = vld [vmem:[#allocation7] sm:$0xff] }
  0x7e   :  { %650 = vmatprep.subr.bf16.mxu0 %v885_v0  ;;  %656 = vmatprep.subr.bf16.mxu1 %v885_v0  ;;  %v130_v3 = vld [vmem:[#allocation7 + $0x8] sm:$0xff]  ;;  %v216_v4 = vld [vmem:[#allocation8] sm:$0xff]  ;;  %v131_v7 = vld [vmem:[#allocation7 + $0x10] sm:$0xff]  ;;  %vm225_vm1 = vcmask 130048   ;;  %vm140_vm2 = vcmask 261120   ;;  %s888_s2 = smov [#allocation14]  }
  0x7f   :  { %614 = vmatprep.mubr.msk.f32.mxu1 %vm886_vm0, %v887_v1  ;;  %607 = vmatprep.mubr.msk.f32.mxu0 %vm886_vm0, %v887_v1  ;;  %v651_v5 = vpack.c.bf16 %v130_v3, %v129_v2  ;;  %v217_v6 = vld [vmem:[#allocation8 + $0x8] sm:$0xff]  ;;  %v132_v8 = vld [vmem:[#allocation7 + $0x18] sm:$0xff]  ;;  %v304_v10 = vld [vmem:[#allocation11] sm:$0xff]  ;;  %s555_s20 = sshll.u32 %s888_s2, 4  ;;  %s556_s20 = int_to_ptr.vmem [resolvable:$true] %s555_s20 }
  0x80   :  { %v657_v9 = vpack.c.bf16 %v217_v6, %v216_v4  ;;  %v654_v11 = vpack.c.bf16 %v132_v8, %v131_v7  ;;  %v305_v12 = vld [vmem:[#allocation11 + $0x8] sm:$0xff]  ;;  %v300_v15 = vld [vmem:[#allocation10] sm:$0xff]  ;;  %v306_v19 = vld [vmem:[#allocation11 + $0x10] sm:$0xff]  ;;  %p849_p1 = scmp.lt.s32.totalorder %s556_s20, %s556_s20 }
  0x81   :  { %652 = vmatpush3.bf16.msra.mxu0 %v651_v5  ;;  %v215_v13 = vld [vmem:[#allocation5] sm:$0xff]  ;;  %v660_v14 = vpack.c.bf16 %v305_v12, %v304_v10  ;;  %v128_v17 = vld [vmem:[#allocation2] sm:$0xff]  ;;  %v307_v20 = vld [vmem:[#allocation11 + $0x18] sm:$0xff] }
  0x82   :  { %653 = vmatprep.subr.bf16.mxu0 %v885_v0  ;;  %658 = vmatpush3.bf16.msra.mxu1 %v657_v9  ;;  %v301_v16 = vld [vmem:[#allocation10 + $0x8] sm:$0xff]  ;;  %v663_v21 = vpack.c.bf16 %v307_v20, %v306_v19  ;;  %v302_v22 = vld [vmem:[#allocation10 + $0x10] sm:$0xff]  ;;  %v303_v23 = vld [vmem:[#allocation10 + $0x18] sm:$0xff] }
  0x83   :  { %659 = vmatprep.subr.bf16.mxu1 %v885_v0  ;;  %v666_v18 = vpack.c.bf16 %v301_v16, %v300_v15  ;;  %v669_v24 = vpack.c.bf16 %v303_v23, %v302_v22  ;;  %v569_v25 = vld [vmem:[%s1102_s5] ss:$0 sm:$0xff]  ;;  %v464_v36 = vld [vmem:[%s1106_s9 + $0x8] sm:$0xff]  ;;  %v465_v38 = vld [vmem:[%s1106_s9 + $0x10] sm:$0xff] }
  0x84   :  { %v567_v28 = vld [vmem:[%s1100_s3] ss:$0 sm:$0xff]  ;;  %v466_v39 = vld [vmem:[%s1106_s9 + $0x18] sm:$0xff] }
  0x85   :  { %655 = vmatpush3.bf16.msra.mxu0 %v654_v11  ;;  %615 = vmatmul.mubr.msk.f32.vlgmr.msra.gmra.mrb[0].mxu1 %vm225_vm1, %v215_v13  ;;  %v463_v35 = vld [vmem:[%s1106_s9] sm:$0xff]  ;;  %v675_v40 = vpack.c.bf16 %v466_v39, %v465_v38  ;;  %s844_s9 = scalar_lea.vmem %s556_s20, 128 }
  0x86   :  { %661 = vmatpush3.bf16.msra.mxu1 %v660_v14  ;;  %665 = vmatprep.subr.bf16.mxu0 %v885_v0  ;;  %v672_v37 = vpack.c.bf16 %v464_v36, %v463_v35  ;;  %v573_v44 = vld [vmem:[#allocation13] ss:$0 sm:$0xff]  ;;  %p845_p0 = scmp.ne.s32.totalorder %s556_s20, %s844_s9  ;;  %p850_p2 = scmp.lt.s32.totalorder %s844_s9, %s844_s9 }
  0x87   :  { %662 = vmatprep.subr.bf16.mxu1 %v885_v0  ;;  %625 = vmatprep.mubr.msk.f32.mxu1 %vm886_vm0, %v887_v1  ;;  %v574_v49 = vld [vmem:[%s1107_s10] ss:$0 sm:$0xff] }
  0x88   :  { %608 = vmatmul.mubr.msk.f32.vlgmr.msra.gmra.mrb[0].mxu0 %vm140_vm2, %v128_v17  ;;  %p851_p3 = por %p850_p2, %p849_p1 }
  0x89   :  { %667 = vmatpush3.bf16.msra.mxu0 %v666_v18  ;;  %636 = vmatprep.mubr.msk.f32.mxu0 %vm886_vm0, %v887_v1 }
  0x8a   :  { %668 = vmatprep.subr.bf16.mxu0 %v885_v0  ;;  %664 = vmatpush3.bf16.msra.mxu1 %v663_v21  ;;  %p852_p4 = pnand %p851_p3, %p845_p0 }
  0x8b   :  { %671 = vmatprep.subr.bf16.mxu1 %v885_v0 }
  0x8d   :  { %670 = vmatpush3.bf16.msra.mxu0 %v669_v24 }
 0x158   :  { %v295_v26 = vpop.f32.mrb[0].mxu1 }
 0x159   :  { %v296_v27 = vadd.f32 %v569_v25, %v295_v26  ;;  %v616_v29 = vpop.f32.mrb[1].mxu1 }
 0x15b   :  { %v299_v30 = vmax.f32 %v296_v27, 0.0  ;;  %v210_v31 = vpop.f32.mrb[0].mxu0 }
 0x15c   :  { %v211_v32 = vadd.f32 %v567_v28, %v210_v31  ;;  %v609_v33 = vpop.f32.mrb[1].mxu0 }
 0x15d   :  { %626 = vmatmul.mubr.msk.f32.vlgmr.msra.gmra.mrb[2].mxu1 %vm140_vm2, %v299_v30 }
 0x15e   :  { %v214_v34 = vmax.f32 %v211_v32, 0.0  ;;  %647 = vmatprep.mubr.msk.f32.mxu1 %vm886_vm0, %v887_v1  ;;  %673 = vmatpush3.bf16.msra.mxu1 %v672_v37 }
 0x15f   :  { %674 = vmatprep.subr.bf16.mxu1 %v885_v0 }
 0x160   :  { %637 = vmatmul.mubr.msk.f32.vlgmr.msra.gmra.mrb[2].mxu0 %vm140_vm2, %v214_v34 }
 0x162   :  { %676 = vmatpush3.bf16.msra.mxu1 %v675_v40 }
 0x230   :  { %v377_v41 = vpop.f32.mrb[2].mxu1 }
 0x231   :  { %v627_v42 = vpop.f32.mrb[3].mxu1 }
 0x233   :  { %v450_v43 = vpop.f32.mrb[2].mxu0 }
 0x234   :  { %v451_v45 = vadd.f32 %v450_v43, %v377_v41  ;;  %v638_v46 = vpop.f32.mrb[3].mxu0 }
 0x236   :  { %v461_v47 = vadd.f32 %v573_v44, %v451_v45 }
 0x238   :  { %v462_v48 = vmax.f32 %v461_v47, 0.0 }
 0x23a   :  { %648 = vmatmul.mubr.msk.f32.vlgmr.msra.gmra.mrb[4].mxu1 %vm140_vm2, %v462_v48 }
 0x30d   :  { %v543_v50 = vpop.f32.mrb[4].mxu1 }
 0x30e   :  { %v544_v51 = vadd.f32 %v574_v49, %v543_v50  ;;  %v649_v52 = vpop.f32.mrb[5].mxu1 }
 0x310   :  { %v547_v53 = vmax.f32 %v544_v51, 0.0 }
 0x312   :  { %548 = vst.msk [vmem:[#allocation14] sm:$0xff] %vm140_vm2, %v547_v53 }
 0x313   :  { %855 = shalt.err (!%p852_p4)
}
 0x314   :  { %s856_s10 = scalar_lea.hbm %s1108_s11, 128 }
 0x315   :  { %p857_p5 = scmp.ne.s32.totalorder %s1108_s11, %s856_s10  ;;  %p860_p6 = scmp.lt.u32.totalorder %s856_s10, %s1108_s11 }
 0x317   :  { %p862_p7 = pnand %p860_p6, %p857_p5 }
 0x319   :  { %865 = shalt.err (!%p862_p7)
}
 0x31a   :  { %558 = dma.vmem_to_hbm [thread:$0]  %s556_s20, 128, %s1108_s11, [#allocation4]  }
 0x31b   :  { %874 = dma.done.wait [#allocation4], 128  }
 0x31c   :  { %875 = vsyncadd [#allocation4], 4294967168 }
 0x31d   :  { %562 = vsyncpa [#allocation3], 1 }
 0x31e   :  { %563 = vsyncpa [#allocation6], 1 }
 0x31f   :  { %564 = vsyncpa [#allocation9], 1 }
 0x320   :  { %565 = vsyncpa [#allocation12], 1 }
 0x321   :  { %566 = vsyncpa [#allocation4], 1 }

</bundles_post_ra>
